<compile_context>
chip_gen: v7x
topology: tpu7x:2x2x1
jax: 0.10.0
libtpu: 0.0.40
codegen_flags: <defaults>
</compile_context>

<pallas_src>
import functools

import jax
import jax.numpy as jnp
from jax.experimental import pallas as pl
from jax.experimental.pallas import tpu as pltpu

LANES = 128
SUBLANES = 8
MAX_BLOCK_ROWS = 1024      # 512 KiB / input block; 5 inputs x 2 bufs = 5 MiB VMEM
NCORES = 2                 # leading parallel axis (megacore split on v7x)


def _basic_loss_kernel(ir_ref, dr_ref, ib_ref, db_ref, m_ref, o_ref, *,
                       n_valid, tiles_per_core, block_rows, needs_mask):
    c = pl.program_id(0)   # parallel (core) axis
    i = pl.program_id(1)   # arbitrary (reduction) axis

    # Zero this core's resident (8, 128) partial-sum block at the start of its
    # reduction sweep.
    @pl.when(i == 0)
    def _():
        o_ref[...] = jnp.zeros_like(o_ref)

    ir = ir_ref[...]
    dr = dr_ref[...]
    ib = ib_ref[...]
    db = db_ref[...]
    m = m_ref[...]

    mse_red = (ir - db * m) ** 2
    mse_blue = (ib - dr * (1.0 - m)) ** 2
    contrib = mse_red + mse_blue                      # (block_rows, 128) f32

    if needs_mask:
        # Ragged tail / fully-out-of-range blocks: zero contributions whose
        # global flat element index is >= n_valid.
        base = (c * tiles_per_core + i) * (block_rows * LANES)
        row_ids = jax.lax.broadcasted_iota(jnp.int32, contrib.shape, 0)
        col_ids = jax.lax.broadcasted_iota(jnp.int32, contrib.shape, 1)
        flat_idx = base + row_ids * LANES + col_ids
        contrib = jnp.where(flat_idx < n_valid, contrib, 0.0)

    # Fold the block down to a single vreg-shaped (8, 128) accumulator with
    # VALU adds only; the expensive cross-lane reduce is deferred to the
    # wrapper (done once, outside the kernel).
    folded = contrib.reshape(block_rows // SUBLANES, SUBLANES, LANES).sum(axis=0)
    o_ref[...] += folded


def basic_loss(input_red, denoise_red, input_blue, denoise_blue, mask_j):
    n = input_red.size
    rows = pl.cdiv(n, LANES)
    padded_n = rows * LANES

    def prep(x):
        x = jnp.ravel(x).astype(jnp.float32)
        if padded_n != n:
            # TODO(synk): rare path (total elements not a multiple of 128) pays
            # one small pad copy; common NCHW shapes take the copy-free branch.
            x = jnp.pad(x, (0, padded_n - n))
        return x.reshape(rows, LANES)

    args = [prep(a) for a in
            (input_red, denoise_red, input_blue, denoise_blue, mask_j)]

    # Large lane-dense blocks (multiple of (8, 128)); grid split 2-way on a
    # leading parallel axis, reduction on the trailing arbitrary axis.
    block_rows = min(MAX_BLOCK_ROWS,
                     ((rows + SUBLANES - 1) // SUBLANES) * SUBLANES)
    n_tiles = pl.cdiv(rows, block_rows)
    tiles_per_core = pl.cdiv(n_tiles, NCORES)
    covered = NCORES * tiles_per_core * block_rows * LANES
    needs_mask = covered > n

    kernel = functools.partial(
        _basic_loss_kernel,
        n_valid=n,
        tiles_per_core=tiles_per_core,
        block_rows=block_rows,
        needs_mask=needs_mask,
    )

    in_spec = pl.BlockSpec((block_rows, LANES),
                           lambda c, i: (c * tiles_per_core + i, 0))
    out_spec = pl.BlockSpec((SUBLANES, LANES), lambda c, i: (c, 0))

    partials = pl.pallas_call(
        kernel,
        out_shape=jax.ShapeDtypeStruct((NCORES * SUBLANES, LANES), jnp.float32),
        grid=(NCORES, tiles_per_core),
        in_specs=[in_spec] * 5,
        out_specs=out_spec,
        compiler_params=pltpu.CompilerParams(
            dimension_semantics=("parallel", "arbitrary")),
    )(*args)

    # Final cross-lane/core reduce + static mean divide in plain JAX.
    return jnp.sum(partials) / n


def basic_loss_ref(input_red, denoise_red, input_blue, denoise_blue, mask_j):
    mse_red = (input_red - denoise_blue * mask_j) ** 2
    mse_blue = (input_blue - denoise_red * (1.0 - mask_j)) ** 2
    return jnp.mean(mse_red + mse_blue)


if __name__ == "__main__":
    key = jax.random.PRNGKey(0)
    shape = (2, 4, 16, 16)
    k1, k2, k3, k4, k5 = jax.random.split(key, 5)
    input_red = jax.random.normal(k1, shape, dtype=jnp.float32)
    denoise_red = jax.random.normal(k2, shape, dtype=jnp.float32)
    input_blue = jax.random.normal(k3, shape, dtype=jnp.float32)
    denoise_blue = jax.random.normal(k4, shape, dtype=jnp.float32)
    mask_j = (jax.random.uniform(k5, shape) > 0.5).astype(jnp.float32)

    out = basic_loss(input_red, denoise_red, input_blue, denoise_blue, mask_j)
    out = jax.block_until_ready(out)

    ref = basic_loss_ref(input_red, denoise_red, input_blue, denoise_blue, mask_j)
    assert jnp.allclose(out, ref, rtol=1e-5, atol=1e-5), (out, ref)
    print("KERNEL_OK")
</pallas_src>

<mosaic_0001>
module attributes {stable_mosaic.version = 11 : i64} {
  func.func @_basic_loss_kernel(%arg0: i32, %arg1: i32, %arg2: memref<16x128xf32, #tpu.memory_space<vmem>>, %arg3: memref<16x128xf32, #tpu.memory_space<vmem>>, %arg4: memref<16x128xf32, #tpu.memory_space<vmem>>, %arg5: memref<16x128xf32, #tpu.memory_space<vmem>>, %arg6: memref<16x128xf32, #tpu.memory_space<vmem>>, %arg7: memref<8x128xf32, #tpu.memory_space<vmem>>) attributes {dimension_semantics = [#tpu.dimension_semantics<parallel>, #tpu.dimension_semantics<arbitrary>], iteration_bounds = array<i64: 2, 1>, scalar_prefetch = 0 : i64, scratch_operands = 0 : i64, tpu.core_type = #tpu.core_type<tc>, window_params = [{transform_indices = @transform_0, window_bounds = array<i64: 16, 128>}, {transform_indices = @transform_1, window_bounds = array<i64: 16, 128>}, {transform_indices = @transform_2, window_bounds = array<i64: 16, 128>}, {transform_indices = @transform_3, window_bounds = array<i64: 16, 128>}, {transform_indices = @transform_4, window_bounds = array<i64: 16, 128>}, {transform_indices = @transform_5, window_bounds = array<i64: 8, 128>}]} {
    %c0_i32 = arith.constant 0 : i32
    %0 = arith.cmpi eq, %arg1, %c0_i32 : i32
    %1 = arith.extui %0 : i1 to i32
    %c0_i32_0 = arith.constant 0 : i32
    %2 = arith.cmpi ne, %1, %c0_i32_0 : i32
    scf.if %2 {
      %cst_17 = arith.constant 0.000000e+00 : f32
      %36 = vector.broadcast %cst_17 : f32 to vector<8x128xf32>
      %c0_18 = arith.constant 0 : index
      %c0_19 = arith.constant 0 : index
      %37 = vector.load %arg7[%c0_18, %c0_19] : memref<8x128xf32, #tpu.memory_space<vmem>>, vector<8x128xf32>
      tpu.vector_store %arg7[%c0_18, %c0_19], %36 {strides = array<i32>} : memref<8x128xf32, #tpu.memory_space<vmem>>, vector<8x128xf32>,
    } else {
    }
    %c0 = arith.constant 0 : index
    %c0_1 = arith.constant 0 : index
    %3 = vector.load %arg2[%c0, %c0_1] : memref<16x128xf32, #tpu.memory_space<vmem>>, vector<16x128xf32>
    %c0_2 = arith.constant 0 : index
    %c0_3 = arith.constant 0 : index
    %4 = vector.load %arg3[%c0_2, %c0_3] : memref<16x128xf32, #tpu.memory_space<vmem>>, vector<16x128xf32>
    %c0_4 = arith.constant 0 : index
    %c0_5 = arith.constant 0 : index
    %5 = vector.load %arg4[%c0_4, %c0_5] : memref<16x128xf32, #tpu.memory_space<vmem>>, vector<16x128xf32>
    %c0_6 = arith.constant 0 : index
    %c0_7 = arith.constant 0 : index
    %6 = vector.load %arg5[%c0_6, %c0_7] : memref<16x128xf32, #tpu.memory_space<vmem>>, vector<16x128xf32>
    %c0_8 = arith.constant 0 : index
    %c0_9 = arith.constant 0 : index
    %7 = vector.load %arg6[%c0_8, %c0_9] : memref<16x128xf32, #tpu.memory_space<vmem>>, vector<16x128xf32>
    %8 = arith.mulf %6, %7 : vector<16x128xf32>
    %9 = arith.subf %3, %8 : vector<16x128xf32>
    %10 = arith.mulf %9, %9 : vector<16x128xf32>
    %cst = arith.constant 1.000000e+00 : f32
    %11 = vector.broadcast %cst : f32 to vector<16x128xf32>
    %12 = arith.subf %11, %7 : vector<16x128xf32>
    %13 = arith.mulf %4, %12 : vector<16x128xf32>
    %14 = arith.subf %5, %13 : vector<16x128xf32>
    %15 = arith.mulf %14, %14 : vector<16x128xf32>
    %16 = arith.addf %10, %15 : vector<16x128xf32>
    %c1_i32 = arith.constant 1 : i32
    %17 = arith.muli %arg0, %c1_i32 : i32
    %18 = arith.addi %17, %arg1 : i32
    %c2048_i32 = arith.constant 2048 : i32
    %19 = arith.muli %18, %c2048_i32 : i32
    %20 = tpu.iota {dimensions = array<i32: 0>} : vector<16x128xi32>
    %21 = tpu.iota {dimensions = array<i32: 1>} : vector<16x128xi32>
    %c128_i32 = arith.constant 128 : i32
    %22 = vector.broadcast %c128_i32 : i32 to vector<16x128xi32>
    %23 = arith.muli %20, %22 : vector<16x128xi32>
    %24 = vector.broadcast %19 : i32 to vector<16x128xi32>
    %25 = arith.addi %24, %23 : vector<16x128xi32>
    %26 = arith.addi %25, %21 : vector<16x128xi32>
    %c2048_i32_10 = arith.constant 2048 : i32
    %27 = vector.broadcast %c2048_i32_10 : i32 to vector<16x128xi32>
    %28 = arith.cmpi slt, %26, %27 : vector<16x128xi32>
    %cst_11 = arith.constant 0.000000e+00 : f32
    %29 = vector.broadcast %cst_11 : f32 to vector<16x128xf32>
    %30 = arith.select %28, %16, %29 : vector<16x128xi1>, vector<16x128xf32>
    %31 = vector.shape_cast %30 : vector<16x128xf32> to vector<2x8x128xf32>
    %cst_12 = arith.constant dense<0.000000e+00> : vector<8x128xf32>
    %32 = vector.multi_reduction <add>, %31, %cst_12 [0] : vector<2x8x128xf32> to vector<8x128xf32>
    %c0_13 = arith.constant 0 : index
    %c0_14 = arith.constant 0 : index
    %33 = vector.load %arg7[%c0_13, %c0_14] : memref<8x128xf32, #tpu.memory_space<vmem>>, vector<8x128xf32>
    %34 = arith.addf %33, %32 : vector<8x128xf32>
    %c0_15 = arith.constant 0 : index
    %c0_16 = arith.constant 0 : index
    %35 = vector.load %arg7[%c0_15, %c0_16] : memref<8x128xf32, #tpu.memory_space<vmem>>, vector<8x128xf32>
    tpu.vector_store %arg7[%c0_15, %c0_16], %34 {strides = array<i32>} : memref<8x128xf32, #tpu.memory_space<vmem>>, vector<8x128xf32>,
    return
  }
  func.func @transform_0(%arg0: i32, %arg1: i32) -> (i32, i32) {
    %c1_i32 = arith.constant 1 : i32
    %0 = arith.muli %arg0, %c1_i32 : i32
    %1 = arith.addi %0, %arg1 : i32
    %c0_i32 = arith.constant 0 : i32
    %c0_i32_0 = arith.constant 0 : i32
    return %1, %c0_i32 : i32, i32
  }
  func.func @transform_1(%arg0: i32, %arg1: i32) -> (i32, i32) {
    %c1_i32 = arith.constant 1 : i32
    %0 = arith.muli %arg0, %c1_i32 : i32
    %1 = arith.addi %0, %arg1 : i32
    %c0_i32 = arith.constant 0 : i32
    %c0_i32_0 = arith.constant 0 : i32
    return %1, %c0_i32 : i32, i32
  }
  func.func @transform_2(%arg0: i32, %arg1: i32) -> (i32, i32) {
    %c1_i32 = arith.constant 1 : i32
    %0 = arith.muli %arg0, %c1_i32 : i32
    %1 = arith.addi %0, %arg1 : i32
    %c0_i32 = arith.constant 0 : i32
    %c0_i32_0 = arith.constant 0 : i32
    return %1, %c0_i32 : i32, i32
  }
  func.func @transform_3(%arg0: i32, %arg1: i32) -> (i32, i32) {
    %c1_i32 = arith.constant 1 : i32
    %0 = arith.muli %arg0, %c1_i32 : i32
    %1 = arith.addi %0, %arg1 : i32
    %c0_i32 = arith.constant 0 : i32
    %c0_i32_0 = arith.constant 0 : i32
    return %1, %c0_i32 : i32, i32
  }
  func.func @transform_4(%arg0: i32, %arg1: i32) -> (i32, i32) {
    %c1_i32 = arith.constant 1 : i32
    %0 = arith.muli %arg0, %c1_i32 : i32
    %1 = arith.addi %0, %arg1 : i32
    %c0_i32 = arith.constant 0 : i32
    %c0_i32_0 = arith.constant 0 : i32
    return %1, %c0_i32 : i32, i32
  }
  func.func @transform_5(%arg0: i32, %arg1: i32) -> (i32, i32) {
    %c0_i32 = arith.constant 0 : i32
    %c0_i32_0 = arith.constant 0 : i32
    return %arg0, %c0_i32 : i32, i32
  }
}

</mosaic_0001>

<bundles_post_ra>
// kernel: tpu_custom_call.1
= control target key start
LH: loop header
LB: loop body
LE: loop exit
PB: predicated region body
PF: predicated region fallthrough
CT: control target
= control target key end

     0   :  { %s1434_s0 = inlined_call_operand.hbm [shape: f32[16,128], index: 0, kind: input, shape index: {}]   ;;  %s1435_s1 = inlined_call_operand.hbm [shape: f32[16,128], index: 1, kind: input, shape index: {}]   ;;  %s1436_s2 = inlined_call_operand.hbm [shape: f32[16,128], index: 2, kind: input, shape index: {}]   ;;  %s1437_s3 = inlined_call_operand.hbm [shape: f32[16,128], index: 3, kind: input, shape index: {}]   ;;  %s1438_s4 = inlined_call_operand.hbm [shape: f32[16,128], index: 4, kind: input, shape index: {}]   ;;  %s1439_s5 = inlined_call_operand.hbm [shape: f32[16,128], index: 5, kind: output, shape index: {}]  }
   0x1   :  { %1453 = sst [smem:[#allocation21_spill]] %s1435_s1 }
   0x2   :  { %1454 = sst [smem:[#allocation22_spill]] %s1437_s3 }
   0x3   :  { %10 = vsyncpa [#allocation3], 0 }
   0x4   :  { %12 = vsyncpa [#allocation3 + $0x1], 0 }
   0x5   :  { %13 = vsyncpa [#allocation6], 0 }
   0x6   :  { %15 = vsyncpa [#allocation6 + $0x1], 0 }
   0x7   :  { %16 = vsyncpa [#allocation9], 0 }
   0x8   :  { %18 = vsyncpa [#allocation9 + $0x1], 0 }
   0x9   :  { %19 = vsyncpa [#allocation4], 0 }
   0xa   :  { %21 = vsyncpa [#allocation4 + $0x1], 0  ;;  %s1071_s18 = smov 0   ;;  %s1073_s19 = smov 0  }
   0xb   :  { %s1075_s20 = smov 0   ;;  %s1077_s21 = smov 0  }
   0xc   :  { %s1079_s22 = smov 0   ;;  %s1081_s23 = smov 0  }
   0xd LB: > { %1455 = sst [smem:[#allocation16_spill]] %s1027_s22  ;;  %s1102_s24 = sadd.s32 4294967295, %s1031_s23   ;;  %s1031_s23 = sphi %s1081_s23, %s27_s23   ;;  %s1027_s22 = sphi %s1079_s22, %s1484_s22   ;;  %s1023_s21 = sphi %s1077_s21, %s1483_s21   ;;  %s1019_s20 = sphi %s1075_s20, %s1487_s20   ;;  %s1015_s19 = sphi %s1073_s19, %s1486_s19   ;;  %s1011_s18 = sphi %s1071_s18, %s1485_s18  }
   0xe   : > { %1456 = sst [smem:[#allocation17_spill]] %s1031_s23  ;;  %s671_s25 = sadd.s32 4294967294, %s1031_s23  }
   0xf   : > { %s39_s26 = sadd.s32 1, %s1027_s22  ;;  %s48_s27 = sadd.s32 1, %s1019_s20 }
  0x10   : > { %p41_p0 = scmp.ge.s32.totalorder %s39_s26, 2  ;;  %p55_p1 = scmp.ne.s32.totalorder %s1019_s20, %s1015_s19 }
  0x11   : > { %p56_p2 = scmp.eq.s32.totalorder %s1031_s23, 0  ;;  %p61_p3 = scmp.ne.s32.totalorder %s1015_s19, %s1011_s18 }
  0x12   : > { %s1489_s26 = smov (%p41_p0, %s39_s26), 0  ;;  %p62_p5 = scmp.eq.s32.totalorder %s1102_s24, 0 }
  0x13   : > { %1457 = sst [smem:[#allocation18_spill]] %s1489_s26  ;;  %p1114_p4 = por %p56_p2, %p55_p1 }
  0x14   : > { %s45_s29 = ssub.s32 %s1027_s22, %s1489_s26  ;;  %p197_p6 = scmp.eq.s32.totalorder %s1102_s24, 1 }
  0x15   : > { %p46_p7 = scmp.eq.s32.totalorder %s45_s29, 0  ;;  %p1122_p8 = por %p62_p5, %p61_p3 }
  0x16   : > { %p1126_p9 = por %p197_p6, %p55_p1  ;;  %p203_p10 = scmp.eq.s32.totalorder %s671_s25, 1 }
  0x17   : > { %s1459_s30 = scalar_select %p1122_p8, 1, 0 }
  0x18   : > { %s1460_s6 = scalar_select %p1126_p9, 1, 0 }
  0x19   : > { %s1131_s7 = scalar_select %p46_p7, %s1019_s20, %s48_s27  }
  0x1a   : > { %p1133_p11 = por %p203_p10, %p61_p3  ;;  %p738_p13 = scmp.lt.s32.totalorder %s1031_s23, 2 }
  0x1b   : > { %1461 = sst [smem:[#allocation19_spill]] %s1131_s7  ;;  %s1440_s9 = sand.u32 1, %s1019_s20  }
  0x1c   : > { %s1462_s8 = scalar_select %p1133_p11, 1, 0 }
  0x1d   : > { %s1142_s10 = sshll.u32 %s1440_s9, 4  ;;  %s1145_s11 = sshll.u32 %s1027_s22, 8 }
  0x1e   : > { %1463 = sst [smem:[#allocation20_spill]] %s1462_s8  ;;  %p1149_p0 = pnand %p738_p13, %p1114_p4 }
  0x1f   : > { %s1442_s13 = sand.u32 1, %s1031_s23   ;;  %s1465_s1 = sld [smem:[#allocation21_spill]] }
  0x20   : > { %s249_s17 = scalar_lea.vmem [#allocation5], %s1142_s10  ;;  %s1167_s27 = scalar_lea.sflag [#allocation6], %s1442_s13 }
  0x21   : > { %s257_s25 = sshll.u32 %s249_s17, 4  ;;  %p1173_p4 = pneg %p1149_p0  ;;  %s1162_s25 = int_to_ptr.vmem [resolvable:$true] %s257_s25 }
  0x25   : > { %s1158_s16 = scalar_lea.hbm %s1465_s1, %s1145_s11  ;;  %s796_s17 = scalar_lea.hbm %s1465_s1, 256 }
  0x26   : > { %s791_s28 = scalar_lea.hbm %s1158_s16, 256  ;;  %p797_p7 = scmp.lt.u32.totalorder %s1158_s16, %s1465_s1 }
  0x27   : > { %p792_p3 = scmp.ne.s32.totalorder %s1158_s16, %s791_s28  ;;  %p798_p10 = scmp.lt.u32.totalorder %s796_s17, %s791_s28 }
  0x28   : > { %p800_p12 = scmp.lt.u32.totalorder %s791_s28, %s1158_s16 }
  0x29   : > { %p794_p5 = pnand %p1173_p4, %p792_p3  ;;  %p799_p13 = por %p798_p10, %p797_p7 }
  0x2b   : > { %p795_p6 = pneg %p794_p5  ;;  %p801_p1 = por %p800_p12, %p799_p13 }
  0x2d   : > { %p802_p2 = pnand %p801_p1, %p795_p6 }
  0x2f   : > { %805 = shalt.err (!%p802_p2)
}
  0x30   : > { %s806_s13 = scalar_lea.vmem %s1162_s25, 256  ;;  %s1033_s14 = smov [#allocation5]  }
  0x31   : > { %p807_p3 = scmp.ne.s32.totalorder %s1162_s25, %s806_s13  ;;  %s811_s15 = sshll.u32 %s1033_s14, 4  ;;  %s812_s15 = int_to_ptr.vmem [resolvable:$false] %s811_s15 }
  0x32   : > { %s813_s26 = scalar_lea.vmem %s812_s15, 512  ;;  %p814_p9 = scmp.lt.s32.totalorder %s1162_s25, %s812_s15 }
  0x33   : > { %p809_p5 = pnand %p807_p3, %p1173_p4  ;;  %p815_p8 = scmp.lt.s32.totalorder %s813_s26, %s806_s13 }
  0x35   : > { %p810_p11 = pneg %p809_p5  ;;  %p816_p7 = por %p815_p8, %p814_p9 }
  0x37   : > { %p817_p10 = pnand %p816_p7, %p810_p11 }
  0x39   : > { %820 = shalt.err (!%p817_p10)
}
  0x3a   : > { %s1445_s9 = smov 128   ;;  %s1447_s28 = smov 8  }
  0x3b   : > { %724 = dma.hbm_to_vmem [thread:$0]  (!%p1149_p0), %s1158_s16, 256, %s1162_s25, %s1167_s27, %s1445_s9, %s1445_s9, %s1447_s28  }
  0x3c   : > { %p1467_p8 = scmp.lt.s32.totalorder %s1031_s23, 3  ;;  %p1468_p9 = scmp.ge.s32.totalorder %s1031_s23, 1 }
  0x3d   : > { %s1470_s3 = sld [smem:[#allocation22_spill]]  ;;  %s293_s26 = scalar_lea.vmem [#allocation8], %s1142_s10 }
  0x3e   : > { %p1204_p11 = pnand %p1468_p9, %p1467_p8  ;;  %s301_s1 = sshll.u32 %s293_s26, 4  ;;  %s1215_s1 = int_to_ptr.vmem [resolvable:$true] %s301_s1 }
  0x3f   : > { %s1471_s16 = sand.u32 1, %s1031_s23  }
  0x40   : > { %s1469_s13 = scalar_select %p1204_p11, 1, 0 }
  0x41   : > { %s1219_s25 = scalar_lea.sflag [#allocation9], %s1471_s16 }
  0x43   : > { %s1212_s15 = scalar_lea.hbm %s1470_s3, %s1145_s11  ;;  %s826_s14 = scalar_lea.hbm %s1470_s3, 256 }
  0x44   : > { %s821_s9 = scalar_lea.hbm %s1212_s15, 256  ;;  %p827_p6 = scmp.lt.u32.totalorder %s1212_s15, %s1470_s3 }
  0x45   : > { %p822_p12 = scmp.ne.s32.totalorder %s1212_s15, %s821_s9  ;;  %p828_p13 = scmp.lt.u32.totalorder %s826_s14, %s821_s9 }
  0x46   : > { %p830_p5 = scmp.lt.u32.totalorder %s821_s9, %s1212_s15 }
  0x47   : > { %p824_p1 = pnand %p822_p12, %p1173_p4  ;;  %p829_p3 = por %p828_p13, %p827_p6 }
  0x49   : > { %p825_p2 = pneg %p824_p1  ;;  %p831_p7 = por %p830_p5, %p829_p3 }
  0x4b   : > { %p832_p10 = pnand %p831_p7, %p825_p2 }
  0x4d   : > { %835 = shalt.err (!%p832_p10)
}
  0x4e   : > { %s836_s26 = scalar_lea.vmem %s1215_s1, 256  ;;  %s1036_s28 = smov [#allocation8]  }
  0x4f   : > { %p837_p8 = scmp.ne.s32.totalorder %s1215_s1, %s836_s26  ;;  %s841_s16 = sshll.u32 %s1036_s28, 4  ;;  %s842_s16 = int_to_ptr.vmem [resolvable:$false] %s841_s16 }
  0x50   : > { %s843_s22 = scalar_lea.vmem %s842_s16, 512  ;;  %p844_p1 = scmp.lt.s32.totalorder %s1215_s1, %s842_s16 }
  0x51   : > { %p839_p9 = pnand %p837_p8, %p1173_p4  ;;  %p845_p11 = scmp.lt.s32.totalorder %s843_s22, %s836_s26 }
  0x53   : > { %p840_p12 = pneg %p839_p9  ;;  %p846_p6 = por %p845_p11, %p844_p1 }
  0x55   : > { %p847_p13 = pnand %p846_p6, %p840_p12 }
  0x57   : > { %850 = shalt.err (!%p847_p13)
}
  0x58   : > { %s1472_s7 = smov 8   ;;  %s1473_s9 = smov 128  }
  0x59   : > { %730 = dma.hbm_to_vmem [thread:$0]  (!%p1149_p0), %s1212_s15, 256, %s1215_s1, %s1219_s25, %s1473_s9, %s1473_s9, %s1472_s7  }
  0x5a   : > { %s1250_s26 = scalar_lea.hbm %s1434_s0, %s1145_s11  ;;  %s227_s28 = scalar_lea.vmem [#allocation2], %s1142_s10 }
  0x5b   : > { %s235_s16 = sshll.u32 %s227_s28, 4  ;;  %s1474_s22 = sand.u32 1, %s1019_s20   ;;  %s1253_s16 = int_to_ptr.vmem [resolvable:$true] %s235_s16 }
  0x5c   : > { %s1257_s3 = scalar_lea.sflag [#allocation3], %s1474_s22  ;;  %s851_s23 = scalar_lea.hbm %s1250_s26, 256 }
  0x5d   : > { %p852_p11 = scmp.ne.s32.totalorder %s1250_s26, %s851_s23  ;;  %s856_s17 = scalar_lea.hbm %s1434_s0, 256 }
  0x5e   : > { %p857_p5 = scmp.lt.u32.totalorder %s1250_s26, %s1434_s0  ;;  %p858_p7 = scmp.lt.u32.totalorder %s856_s17, %s851_s23 }
  0x5f   : > { %p854_p2 = pnand %p852_p11, %p1173_p4  ;;  %p860_p8 = scmp.lt.u32.totalorder %s851_s23, %s1250_s26 }
  0x60   : > { %p859_p10 = por %p858_p7, %p857_p5 }
  0x61   : > { %p855_p3 = pneg %p854_p2 }
  0x62   : > { %p861_p9 = por %p860_p8, %p859_p10 }
  0x64   : > { %p862_p12 = pnand %p861_p9, %p855_p3 }
  0x66   : > { %865 = shalt.err (!%p862_p12)
}
  0x67   : > { %s866_s28 = scalar_lea.vmem %s1253_s16, 256  ;;  %s1037_s22 = smov [#allocation2]  }
  0x68   : > { %p867_p1 = scmp.ne.s32.totalorder %s1253_s16, %s866_s28  ;;  %s871_s1 = sshll.u32 %s1037_s22, 4  ;;  %s872_s1 = int_to_ptr.vmem [resolvable:$false] %s871_s1 }
  0x69   : > { %s873_s8 = scalar_lea.vmem %s872_s1, 512  ;;  %p874_p11 = scmp.lt.s32.totalorder %s1253_s16, %s872_s1 }
  0x6a   : > { %p869_p6 = pnand %p867_p1, %p1173_p4  ;;  %p875_p2 = scmp.lt.s32.totalorder %s873_s8, %s866_s28 }
  0x6c   : > { %p870_p13 = pneg %p869_p6  ;;  %p876_p5 = por %p875_p2, %p874_p11 }
  0x6e   : > { %p877_p7 = pnand %p876_p5, %p870_p13 }
  0x70   : > { %880 = shalt.err (!%p877_p7)
}
  0x71   : > { %721 = dma.hbm_to_vmem [thread:$0]  (!%p1149_p0), %s1250_s26, 256, %s1253_s16, %s1257_s3, %s1473_s9, %s1473_s9, %s1472_s7  }
  0x72   : > { %s1288_s17 = scalar_lea.hbm %s1436_s2, %s1145_s11  ;;  %s271_s14 = scalar_lea.vmem [#allocation7], %s1142_s10 }
  0x73   : > { %s279_s28 = sshll.u32 %s271_s14, 4  ;;  %s881_s22 = scalar_lea.hbm %s1288_s17, 256  ;;  %s1291_s28 = int_to_ptr.vmem [resolvable:$true] %s279_s28 }
  0x74   : > { %p882_p3 = scmp.ne.s32.totalorder %s1288_s17, %s881_s22  ;;  %s886_s26 = scalar_lea.hbm %s1436_s2, 256 }
  0x75   : > { %p887_p9 = scmp.lt.u32.totalorder %s1288_s17, %s1436_s2  ;;  %p888_p12 = scmp.lt.u32.totalorder %s886_s26, %s881_s22 }
  0x76   : > { %p884_p10 = pnand %p882_p3, %p1173_p4  ;;  %p890_p6 = scmp.lt.u32.totalorder %s881_s22, %s1288_s17 }
  0x77   : > { %p889_p1 = por %p888_p12, %p887_p9 }
  0x78   : > { %p885_p8 = pneg %p884_p10 }
  0x79   : > { %p891_p13 = por %p890_p6, %p889_p1 }
  0x7b   : > { %p892_p11 = pnand %p891_p13, %p885_p8 }
  0x7d   : > { %895 = shalt.err (!%p892_p11)
}
  0x7e   : > { %s896_s23 = scalar_lea.vmem %s1291_s28, 256  ;;  %s1038_s15 = smov [#allocation7]  }
  0x7f   : > { %p897_p2 = scmp.ne.s32.totalorder %s1291_s28, %s896_s23  ;;  %s901_s14 = sshll.u32 %s1038_s15, 4  ;;  %s902_s14 = int_to_ptr.vmem [resolvable:$false] %s901_s14 }
  0x80   : > { %s903_s1 = scalar_lea.vmem %s902_s14, 512  ;;  %p904_p3 = scmp.lt.s32.totalorder %s1291_s28, %s902_s14 }
  0x81   : > { %p899_p5 = pnand %p897_p2, %p1173_p4  ;;  %p905_p10 = scmp.lt.s32.totalorder %s903_s1, %s896_s23 }
  0x83   : > { %p900_p7 = pneg %p899_p5  ;;  %p906_p9 = por %p905_p10, %p904_p3 }
  0x85   : > { %p907_p12 = pnand %p906_p9, %p900_p7 }
  0x87   : > { %910 = shalt.err (!%p907_p12)
}
  0x88   : > { %727 = dma.hbm_to_vmem [thread:$0]  (!%p1149_p0), %s1288_s17, 256, %s1291_s28, %s1167_s27, %s1473_s9, %s1473_s9, %s1472_s7  }
  0x89   : > { %s1322_s26 = scalar_lea.hbm %s1438_s4, %s1145_s11  ;;  %s315_s16 = scalar_lea.vmem [#allocation10], %s1142_s10 }
  0x8a   : > { %s323_s8 = sshll.u32 %s315_s16, 4  ;;  %s911_s23 = scalar_lea.hbm %s1322_s26, 256  ;;  %s1325_s8 = int_to_ptr.vmem [resolvable:$true] %s323_s8 }
  0x8b   : > { %p912_p8 = scmp.ne.s32.totalorder %s1322_s26, %s911_s23  ;;  %s916_s17 = scalar_lea.hbm %s1438_s4, 256 }
  0x8c   : > { %p917_p13 = scmp.lt.u32.totalorder %s1322_s26, %s1438_s4  ;;  %p918_p11 = scmp.lt.u32.totalorder %s916_s17, %s911_s23 }
  0x8d   : > { %p914_p1 = pnand %p912_p8, %p1173_p4  ;;  %p920_p5 = scmp.lt.u32.totalorder %s911_s23, %s1322_s26 }
  0x8e   : > { %p919_p2 = por %p918_p11, %p917_p13 }
  0x8f   : > { %p915_p6 = pneg %p914_p1 }
  0x90   : > { %p921_p7 = por %p920_p5, %p919_p2 }
  0x92   : > { %p922_p3 = pnand %p921_p7, %p915_p6 }
  0x94   : > { %925 = shalt.err (!%p922_p3)
}
  0x95   : > { %s926_s10 = scalar_lea.vmem %s1325_s8, 256  ;;  %s1039_s14 = smov [#allocation10]  }
  0x96   : > { %p927_p10 = scmp.ne.s32.totalorder %s1325_s8, %s926_s10  ;;  %s931_s1 = sshll.u32 %s1039_s14, 4  ;;  %s932_s1 = int_to_ptr.vmem [resolvable:$false] %s931_s1 }
  0x97   : > { %s933_s22 = scalar_lea.vmem %s932_s1, 512  ;;  %p934_p8 = scmp.lt.s32.totalorder %s1325_s8, %s932_s1 }
  0x98   : > { %p929_p9 = pnand %p927_p10, %p1173_p4  ;;  %p935_p1 = scmp.lt.s32.totalorder %s933_s22, %s926_s10 }
  0x9a   : > { %p930_p12 = pneg %p929_p9  ;;  %p936_p13 = por %p935_p1, %p934_p8 }
  0x9c   : > { %p937_p11 = pnand %p936_p13, %p930_p12 }
  0x9e   : > { %940 = shalt.err (!%p937_p11)
}
  0x9f   : > { %733 = dma.hbm_to_vmem [thread:$0]  (!%p1149_p0), %s1322_s26, 256, %s1325_s8, %s1219_s25, %s1473_s9, %s1473_s9, %s1472_s7  }
  0xa0   : > { %p1475_p4 = scmp.ne.s32.totalorder %s1469_s13, 0 }
  0xa1   : > { %s1355_s29 = sand.u32 (!%p1475_p4), 1, %s1015_s19   ;;  %p1476_p6 = scmp.ne.s32.totalorder (!%p1475_p4), %s1459_s30, 0 }
  0xa2   : > { %335 = sbr.rel (%p1475_p4) target bundleno = 208 (0xd0), region = 40  ;;  %s1358_s3 = sshll.u32 (!%p1475_p4), %s1355_s29, 4 }
  0xa3   : > { %s338_s12 = scalar_lea.sflag (!%p1475_p4), [#allocation3], %s1355_s29  ;;  %s341_s16 = scalar_lea.vmem (!%p1475_p4), [#allocation2], %s1358_s3 }
  0xa9   : > { %994 = dma.done.wait (%p1476_p6), %s338_s12, 256  }
  0xaa   : > { %996 = vsyncadd (%p1476_p6), %s338_s12, 4294967040  ;;  %s346_s13 = sand.u32 1, %s1102_s24   ;;  %s350_s7 = scalar_lea.vmem [#allocation5], %s1358_s3 }
  0xab   : > { %s347_s25 = scalar_lea.sflag [#allocation6], %s346_s13 }
  0xac   : > { %998 = dma.done.wait (%p1476_p6), %s347_s25, 512  }
  0xad   : > { %1000 = vsyncadd (%p1476_p6), %s347_s25, 4294966784  ;;  %s359_s9 = scalar_lea.vmem [#allocation7], %s1358_s3  ;;  %s365_s26 = scalar_lea.sflag [#allocation9], %s346_s13 }
  0xae   : > { %s368_s8 = scalar_lea.vmem [#allocation8], %s1358_s3 }
  0xaf   : > { %1002 = dma.done.wait (%p1476_p6), %s365_s26, 512  }
  0xb0   : > { %1004 = vsyncadd (%p1476_p6), %s365_s26, 4294966784  ;;  %v467_v0 = vlaneseq  ;;  %s696_s24 = sshll.u32 %s1023_s21, 11  ;;  %v439_v6 = vld [vmem:[%s341_s16] sm:$0xff]  ;;  %v446_v9 = vld [vmem:[%s368_s8 + $0x8] sm:$0xff]  ;;  %s377_s23 = scalar_lea.vmem [#allocation10], %s1358_s3 }
  0xb1   : > { %v474_v5 = vstv %s696_s24  ;;  %v441_v7 = vld [vmem:[%s350_s7] sm:$0xff]  ;;  %v440_v13 = vld [vmem:[%s341_s16 + $0x8] sm:$0xff]  ;;  %s695_s30 = sshll.u32 %s1355_s29, 3  ;;  %s698_s15 = sshll.u32 %s1023_s21, 7 }
  0xb2   : > { %v468_v1 = vshrl.u32 %v467_v0, 7  ;;  %v445_v8 = vld [vmem:[%s368_s8] sm:$0xff]  ;;  %v471_v11 = vand.u32 127, %v467_v0  ;;  %v442_v14 = vld [vmem:[%s350_s7 + $0x8] sm:$0xff]  ;;  %s423_s27 = scalar_lea.vmem [#allocation11], %s695_s30  ;;  %s1385_s10 = scalar_lea.hbm %s1439_s5, %s698_s15 }
  0xb3   : > { %v447_v10 = vld [vmem:[%s377_s23] sm:$0xff]  ;;  %v448_v15 = vld [vmem:[%s377_s23 + $0x8] sm:$0xff]  ;;  %s501_s17 = sshll.u32 %s423_s27, 4  ;;  %s488_s14 = scalar_lea.sflag [#allocation4], %s1355_s29  ;;  %s1387_s17 = int_to_ptr.vmem [resolvable:$true] %s501_s17 }
  0xb4   : > { %v469_v2 = vadd.s32 8, %v468_v1  ;;  %v472_v3 = vmul.u32 128, %v468_v1  ;;  %v449_v16 = vmul.f32 %v447_v10, %v445_v8  ;;  %v455_v17 = vsub.f32 1.0, %v447_v10  ;;  %v443_v19 = vld [vmem:[%s359_s9] sm:$0xff]  ;;  %v444_v22 = vld [vmem:[%s359_s9 + $0x8] sm:$0xff]  ;;  %s941_s1 = scalar_lea.vmem %s1387_s17, 128 }
  0xb5   : > { %v450_v20 = vmul.f32 %v448_v15, %v446_v9  ;;  %v456_v21 = vsub.f32 1.0, %v448_v15  ;;  %p942_p0 = scmp.ne.s32.totalorder %s1387_s17, %s941_s1  ;;  %p1477_p2 = scmp.ne.s32.totalorder %s1460_s6, 0 }
  0xb6   : > { %v473_v4 = vmul.u32 128, %v469_v2  ;;  %v475_v12 = vadd.s32 %v474_v5, %v472_v3  ;;  %v451_v23 = vsub.f32 %v439_v6, %v449_v16  ;;  %v457_v24 = vmul.f32 %v455_v17, %v441_v7  ;;  %s1040_s21 = smov [#allocation11]  }
  0xb7   : > { %v452_v25 = vsub.f32 %v440_v13, %v450_v20  ;;  %v458_v26 = vmul.f32 %v456_v21, %v442_v14  ;;  %p943_p5 = pnand %p942_p0, %p1477_p2  ;;  %s945_s22 = sshll.u32 %s1040_s21, 4  ;;  %s946_s22 = int_to_ptr.vmem [resolvable:$false] %s945_s22 }
  0xb8   : > { %v476_v18 = vadd.s32 %v474_v5, %v473_v4  ;;  %v477_v27 = vadd.s32 %v475_v12, %v471_v11  ;;  %v453_v28 = vmul.f32 %v451_v23, %v451_v23  ;;  %v459_v29 = vsub.f32 %v443_v19, %v457_v24  ;;  %s947_s3 = scalar_lea.vmem %s946_s22, 256  ;;  %p948_p3 = scmp.lt.s32.totalorder %s1387_s17, %s946_s22 }
  0xb9   : > { %v454_v31 = vmul.f32 %v452_v25, %v452_v25  ;;  %v460_v32 = vsub.f32 %v444_v22, %v458_v26  ;;  %p944_p7 = pneg %p943_p5  ;;  %p949_p10 = scmp.lt.s32.totalorder %s947_s3, %s941_s1 }
  0xba   : > { %v478_v30 = vadd.s32 %v476_v18, %v471_v11  ;;  %v461_v33 = vmul.f32 %v459_v29, %v459_v29  ;;  %vm479_vm0 = vcmp.lt.s32.totalorder %v477_v27, 2048 }
  0xbb   : > { %v462_v34 = vmul.f32 %v460_v32, %v460_v32  ;;  %p950_p9 = por %p949_p10, %p948_p3 }
  0xbc   : > { %v463_v35 = vadd.f32 %v461_v33, %v453_v28  ;;  %vm480_vm1 = vcmp.lt.s32.totalorder %v478_v30, 2048 }
  0xbd   : > { %v464_v36 = vadd.f32 %v462_v34, %v454_v31  ;;  %p951_p12 = pnand %p950_p9, %p944_p7 }
  0xbe   : > { %v481_v37 = vsel %vm479_vm0, %v463_v35, 0.0 }
  0xbf   : > { %v482_v38 = vsel %vm480_vm1, %v464_v36, 0.0 }
  0xc0   : > { %v483_v39 = vadd.f32 %v482_v38, %v481_v37 }
  0xc2   : > { %486 = vst [vmem:[%s423_s27] sm:$0xff] %v483_v39 }
  0xc3   : > { %954 = shalt.err (!%p951_p12)
}
  0xc4   : > { %s955_s29 = scalar_lea.hbm %s1385_s10, 128  ;;  %s959_s13 = scalar_lea.hbm %s1439_s5, 256 }
  0xc5   : > { %p956_p8 = scmp.ne.s32.totalorder %s1385_s10, %s955_s29  ;;  %p960_p11 = scmp.lt.u32.totalorder %s1385_s10, %s1439_s5 }
  0xc6   : > { %p961_p4 = scmp.lt.u32.totalorder %s959_s13, %s955_s29  ;;  %p963_p0 = scmp.lt.u32.totalorder %s955_s29, %s1385_s10 }
  0xc7   : > { %p957_p1 = pnand %p956_p8, %p1477_p2 }
  0xc8   : > { %p962_p6 = por %p961_p4, %p960_p11 }
  0xc9   : > { %p958_p13 = pneg %p957_p1 }
  0xca   : > { %p964_p5 = por %p963_p0, %p962_p6 }
  0xcc   : > { %p965_p7 = pnand %p964_p5, %p958_p13 }
  0xce   : > { %968 = shalt.err (!%p965_p7)
}
  0xcf   : > { %716 = dma.vmem_to_hbm [thread:$0]  (%p1477_p2), %s1387_s17, 128, %s1385_s10, %s488_s14  }
  0xd0 PF: > { %s1478_s9 = sld [smem:[#allocation20_spill]]  ;;  %s1479_s26 = sld [smem:[#allocation17_spill]] }
  0xd1   : > { %s513_s8 = sand.u32 1, %s1011_s18  }
  0xd2   : > { %s514_s24 = scalar_lea.sflag [#allocation4], %s513_s8 }
  0xd6   : > { %p1480_p3 = scmp.ne.s32.totalorder %s1478_s9, 0  ;;  %p1481_p10 = scmp.ge.s32.totalorder %s1479_s26, 2 }
  0xd8   : > { %p735_p9 = pnand %p1481_p10, %p1480_p3 }
  0xda   : > { %1006 = dma.done.wait (!%p735_p9), %s514_s24, 128  }
  0xdb   : > { %1008 = vsyncadd (!%p735_p9), %s514_s24, 4294967168  ;;  %s27_s23 = sadd.s32 1, %s1479_s26   ;;  %s1482_s6 = sld [smem:[#allocation19_spill]] }
  0xdc   : > { %p24_p12 = scmp.ge.s32.totalorder %s27_s23, 4   ;;  %s1483_s21 = sld [smem:[#allocation16_spill]] }
  0xdd   : > { %s1484_s22 = sld [smem:[#allocation18_spill]]  ;;  %s1485_s18 = smov %s1015_s19 }
  0xde   : > { %s1486_s19 = smov %s1019_s20  ;;  %26 = sbr.rel (!%p24_p12) target bundleno = 13 (0xd), region = 137 }
  0xe1   : > { %s1487_s20 = smov %s1482_s6 }
  0xe5   :  { %519 = vsyncpa [#allocation3], 1 }
  0xe6   :  { %521 = vsyncpa [#allocation3 + $0x1], 1 }
  0xe7   :  { %522 = vsyncpa [#allocation6], 1 }
  0xe8   :  { %524 = vsyncpa [#allocation6 + $0x1], 1 }
  0xe9   :  { %525 = vsyncpa [#allocation9], 1 }
  0xea   :  { %527 = vsyncpa [#allocation9 + $0x1], 1 }
  0xeb   :  { %528 = vsyncpa [#allocation4], 1 }
  0xec   :  { %530 = vsyncpa [#allocation4 + $0x1], 1 }

</bundles_post_ra>
